<compile_context>
chip_gen: v6e
topology: v6e:2x2x1
jax: 0.10.0
libtpu: 0.0.40
codegen_flags: <defaults>
</compile_context>

<pallas_src>
import functools

import jax
import jax.numpy as jnp
from jax.experimental import pallas as pl
from jax.experimental.pallas import tpu as pltpu

EPS = 1e-05          # used by the (external) depth/pose path, kept for parity
MAX_ERROR = 100.0    # used by compute_loss's reproj clamp (external pose algebra)
MAX_FLOW = 400

LANE = 128
SUBLANE = 8
ROW_ALIGN = 16       # safe second-minor block alignment for f32 & bf16 tiling


@functools.lru_cache(maxsize=None)
def _vmem_budgets():
    """Per-generation VMEM sizing: (tiled-operand byte budget, vmem_limit_bytes)."""
    try:
        cap = int(pltpu.get_tpu_info().vmem_capacity_bytes)
    except Exception:
        cap = 64 * 1024 * 1024          # conservative fallback (v7x-sized)
    vmem_limit = min((cap * 3) // 4, 100 * 1024 * 1024)   # ~48 MiB v7x, ~96 MiB v5e/v6e
    tile_budget = vmem_limit // 3                         # headroom for scratch/out bufs
    return tile_budget, vmem_limit


def _round_up(x, m):
    return ((x + m - 1) // m) * m


def _choose_tiling(hw, bytes_per_row, budget_bytes, min_tiles=1):
    """Pick (rows_per_tile, padded_total_rows) for an HW axis laid out as
    (rows, 128).  rows is padded to a multiple of 8 sublanes; rows_per_tile
    either equals the padded total or is a multiple of ROW_ALIGN dividing it.
    min_tiles>1 caps the tile so the 'parallel' grid axis gets >=min_tiles
    iterations (keeps both v7x TensorCores busy)."""
    rows = _round_up(max(1, -(-hw // LANE)), SUBLANE)
    cap = max(ROW_ALIGN, int(budget_bytes) // max(int(bytes_per_row), 1))
    if min_tiles > 1 and rows >= min_tiles * ROW_ALIGN:
        cap = min(cap, max(ROW_ALIGN, (rows // (min_tiles * ROW_ALIGN)) * ROW_ALIGN))
    if rows <= cap:
        return rows, rows
    rt = max(ROW_ALIGN, (cap // ROW_ALIGN) * ROW_ALIGN)
    n_tiles = -(-rows // rt)
    return rt, n_tiles * rt


# ---------------------------------------------------------------------------
# Kernel 1: correlation weighting (PoseRefiner.forward hot elementwise path)
# ---------------------------------------------------------------------------
def _make_corr_weight_kernel(num_channels, out_dtype):
    def kernel(inv_sigma_ref, g1_ref, g2_ref, depth_ref, out_ref):
        # inv_sigma_ref: SMEM (1,) f32
        # g1/g2:   (1, C, RT, 128) compute dtype (bf16)
        # depth:   (1, 1, RT, 128) f32        out: (1, 1, RT, 128) out_dtype
        inv_sigma = inv_sigma_ref[0]
        # Per-channel multiply-accumulate: keeps the live set to a few vregs
        # (no (C, RT, 128) f32 upcast temporaries); channel dim is a major axis
        # so each step is a plain full-tile VPU FMA.
        dotp = g1_ref[0, 0].astype(jnp.float32) * g2_ref[0, 0].astype(jnp.float32)
        for c in range(1, num_channels):
            dotp = dotp + (g1_ref[0, c].astype(jnp.float32)
                           * g2_ref[0, c].astype(jnp.float32))
        mask = (depth_ref[0, 0] > 0.0).astype(jnp.float32)   # depth kept f32 (exact >0)
        out_ref[0, 0] = (jnp.exp(-jnp.abs(1.0 - dotp) * inv_sigma) * mask).astype(out_dtype)

    return kernel


def correlation_weight_pallas(sigma, geofea1_crop, geofea2_crop_warpped, syn_depth,
                              compute_dtype=jnp.bfloat16, out_dtype=jnp.float32):
    """corr_weight = exp(-|1 - <geofea1, geofea2_warped>_c| / sigma) * (syn_depth > 0).

    Returns (B, 1, H, W, 1), matching the PyTorch permute(0,2,3,1)[:, None].
    out_dtype may be set to bfloat16 if the downstream consumer tolerates it."""
    B, C, H, W = geofea1_crop.shape
    HW = H * W
    fbytes = jnp.dtype(compute_dtype).itemsize
    obytes = jnp.dtype(out_dtype).itemsize
    tile_budget, vmem_limit = _vmem_budgets()
    # double-buffered per-row footprint of tiled operands (2 geofea, depth, out)
    bytes_per_row = 2 * (2 * C * LANE * fbytes + LANE * 4 + LANE * obytes)
    RT, R = _choose_tiling(HW, bytes_per_row, tile_budget)
    pad = R * LANE - HW

    g1 = geofea1_crop.reshape(B, C, HW).astype(compute_dtype)
    g2 = geofea2_crop_warpped.reshape(B, C, HW).astype(compute_dtype)
    d = syn_depth.reshape(B, 1, HW).astype(jnp.float32)
    if pad:
        g1 = jnp.pad(g1, ((0, 0), (0, 0), (0, pad)))
        g2 = jnp.pad(g2, ((0, 0), (0, 0), (0, pad)))
        d = jnp.pad(d, ((0, 0), (0, 0), (0, pad)))        # pad depth=0 -> mask=0
    g1 = g1.reshape(B, C, R, LANE)
    g2 = g2.reshape(B, C, R, LANE)
    d = d.reshape(B, 1, R, LANE)
    inv_sigma = (1.0 / sigma.astype(jnp.float32)).reshape(1)   # hoisted reciprocal

    num_tiles = R // RT
    grid_spec = pltpu.PrefetchScalarGridSpec(
        num_scalar_prefetch=0,
        grid=(num_tiles, B),
        in_specs=[
            pl.BlockSpec(memory_space=pltpu.MemorySpace.SMEM),            # inv_sigma
            pl.BlockSpec((1, C, RT, LANE), lambda t, b: (b, 0, t, 0)),    # geofea1
            pl.BlockSpec((1, C, RT, LANE), lambda t, b: (b, 0, t, 0)),    # geofea2 warped
            pl.BlockSpec((1, 1, RT, LANE), lambda t, b: (b, 0, t, 0)),    # syn_depth
        ],
        out_specs=pl.BlockSpec((1, 1, RT, LANE), lambda t, b: (b, 0, t, 0)),
    )
    out = pl.pallas_call(
        _make_corr_weight_kernel(C, out_dtype),
        out_shape=jax.ShapeDtypeStruct((B, 1, R, LANE), out_dtype),
        grid_spec=grid_spec,
        compiler_params=pltpu.CompilerParams(
            dimension_semantics=("parallel", "parallel"),
            vmem_limit_bytes=vmem_limit),
    )(inv_sigma, g1, g2, d)
    out = out.reshape(B, 1, R * LANE)[:, :, :HW].reshape(B, 1, H, W)
    return out[..., None]


# ---------------------------------------------------------------------------
# Kernel 2: RAFT sequence flow loss (weighted masked L1 + EPE statistics)
# ---------------------------------------------------------------------------
def _make_seq_flow_loss_kernel(n_predictions, max_flow):
    max_flow_sq = float(max_flow) ** 2

    def _tile_sum(x):
        # (RT, 128) -> (8, 128): layout-preserving reshape + leading-dim vadds.
        rt, lanes = x.shape
        return jnp.sum(x.reshape(rt // SUBLANE, SUBLANE, lanes), axis=0)

    def kernel(w_ref, preds_ref, gt_ref, valid_ref, out_ref,
               gx_ref, gy_ref, vmask_ref, acc_ref):
        # w_ref:     SMEM (N,) f32 loss weights
        # preds_ref: (1, 1, 2, RT, 128) bf16  (one prediction per grid step)
        # gt_ref:    (1, 2, RT, 128)    f32   (resident across N)
        # valid_ref: (1, 1, RT, 128)    f32   (resident across N)
        # out_ref:   (1, 6, 8, 128)     f32   per-tile partial sums (written once)
        # gx/gy/vmask_ref: (RT, 128) f32 scratch   acc_ref: (6, 8, 128) f32 scratch
        b = pl.program_id(1)
        n = pl.program_id(2)
        last_b = pl.num_programs(1) - 1

        @pl.when(jnp.logical_and(b == 0, n == 0))
        def _():
            acc_ref[...] = jnp.zeros_like(acc_ref)

        # gt / valid-mask work hoisted out of the prediction loop (once per b).
        @pl.when(n == 0)
        def _():
            gx = gt_ref[0, 0]
            gy = gt_ref[0, 1]
            gx_ref[...] = gx
            gy_ref[...] = gy
            vmask_ref[...] = jnp.logical_and(
                valid_ref[0, 0] >= 0.5,
                gx * gx + gy * gy < max_flow_sq        # no sqrt needed
            ).astype(jnp.float32)

        gx = gx_ref[...]
        gy = gy_ref[...]
        vmask = vmask_ref[...]
        dx = preds_ref[0, 0, 0].astype(jnp.float32) - gx
        dy = preds_ref[0, 0, 1].astype(jnp.float32) - gy

        # weighted masked L1 contribution of prediction n, reduced in-kernel
        acc_ref[0] += w_ref[n] * _tile_sum((jnp.abs(dx) + jnp.abs(dy)) * vmask)

        # EPE statistics only use the last prediction
        @pl.when(n == n_predictions - 1)
        def _():
            epe = jnp.sqrt(dx * dx + dy * dy)
            acc_ref[1] += _tile_sum(vmask)
            acc_ref[2] += _tile_sum(epe * vmask)
            acc_ref[3] += _tile_sum((epe < 1.0).astype(jnp.float32) * vmask)
            acc_ref[4] += _tile_sum((epe < 3.0).astype(jnp.float32) * vmask)
            acc_ref[5] += _tile_sum((epe < 5.0).astype(jnp.float32) * vmask)

        # single tiny writeback per tile (no per-pixel partials to HBM)
        @pl.when(jnp.logical_and(b == last_b, n == n_predictions - 1))
        def _():
            out_ref[0] = acc_ref[...]

    return kernel


def raft_sequence_flow_loss_pallas(flow_preds, flow_gt, valid, gamma=0.8,
                                   max_flow=MAX_FLOW, compute_dtype=jnp.bfloat16):
    """Pallas implementation of raft_sequence_flow_loss."""
    N = len(flow_preds)
    B, _, H, W = flow_preds[0].shape
    HW = H * W
    fbytes = jnp.dtype(compute_dtype).itemsize
    tile_budget, vmem_limit = _vmem_budgets()
    # per-row VMEM footprint: preds (bf16, 2x buffered) + gt/valid (f32, 2x) + 3 f32 scratch planes
    bytes_per_row = (2 * 2 * LANE * fbytes     # preds
                     + 2 * 2 * LANE * 4        # gt
                     + 2 * LANE * 4            # valid
                     + 3 * LANE * 4)           # gx/gy/vmask scratch
    RT, R = _choose_tiling(HW, bytes_per_row, tile_budget, min_tiles=2)
    pad = R * LANE - HW

    # cast each prediction BEFORE the stack (halves concat bytes); gt stays f32
    preds = jnp.stack([p.astype(compute_dtype).reshape(B, 2, HW) for p in flow_preds], axis=0)
    gt = flow_gt.astype(jnp.float32).reshape(B, 2, HW)
    v = valid.astype(jnp.float32).reshape(B, 1, HW)
    if pad:
        preds = jnp.pad(preds, ((0, 0), (0, 0), (0, 0), (0, pad)))
        gt = jnp.pad(gt, ((0, 0), (0, 0), (0, pad)))
        v = jnp.pad(v, ((0, 0), (0, 0), (0, pad)))       # pad valid=0 -> no contribution
    preds = preds.reshape(N, B, 2, R, LANE)
    gt = gt.reshape(B, 2, R, LANE)
    v = v.reshape(B, 1, R, LANE)

    weights = jnp.asarray([float(gamma) ** (N - i - 1) for i in range(N)], jnp.float32)

    num_tiles = R // RT
    kernel = _make_seq_flow_loss_kernel(N, max_flow)
    partials = pl.pallas_call(
        kernel,
        out_shape=jax.ShapeDtypeStruct((num_tiles, 6, SUBLANE, LANE), jnp.float32),
        grid_spec=pltpu.PrefetchScalarGridSpec(
            num_scalar_prefetch=0,
            grid=(num_tiles, B, N),   # HW tile (parallel), batch (acc), prediction (acc)
            in_specs=[
                pl.BlockSpec(memory_space=pltpu.MemorySpace.SMEM),                     # weights
                pl.BlockSpec((1, 1, 2, RT, LANE), lambda t, b, n: (n, b, 0, t, 0)),    # preds
                pl.BlockSpec((1, 2, RT, LANE), lambda t, b, n: (b, 0, t, 0)),          # gt
                pl.BlockSpec((1, 1, RT, LANE), lambda t, b, n: (b, 0, t, 0)),          # valid
            ],
            out_specs=pl.BlockSpec((1, 6, SUBLANE, LANE), lambda t, b, n: (t, 0, 0, 0)),
            scratch_shapes=[
                pltpu.VMEM((RT, LANE), jnp.float32),        # gx (hoisted gt x)
                pltpu.VMEM((RT, LANE), jnp.float32),        # gy (hoisted gt y)
                pltpu.VMEM((RT, LANE), jnp.float32),        # valid mask
                pltpu.VMEM((6, SUBLANE, LANE), jnp.float32),  # per-tile partial sums
            ],
        ),
        compiler_params=pltpu.CompilerParams(
            dimension_semantics=("parallel", "arbitrary", "arbitrary"),
            vmem_limit_bytes=vmem_limit),
    )(weights, preds, gt, v)

    sums = jnp.sum(partials, axis=(0, 2, 3))   # (6,) — tiny final reduction (glue)
    n_total = float(B * 2 * H * W)
    flow_loss = sums[0] / n_total
    n_valid = sums[1]
    safe_nv = jnp.maximum(n_valid, 1.0)

    def _metric(x):                            # guard n_valid == 0 (torch would NaN)
        return jnp.where(n_valid > 0, x / safe_nv, 0.0)

    metrics = {
        "epe": _metric(sums[2]),
        "1px": _metric(sums[3]),
        "3px": _metric(sums[4]),
        "5px": _metric(sums[5]),
    }
    return flow_loss, metrics


# ---------------------------------------------------------------------------
# Thin module wrapper mirroring the PoseRefiner parameterization
# ---------------------------------------------------------------------------
class PoseRefinerPallas:
    def __init__(self, with_corr_weight=True, compute_dtype=jnp.bfloat16,
                 corr_out_dtype=jnp.float32):
        # matches nn.ParameterList([nn.Parameter(torch.ones(1) * 1)])
        self.sigma = [jnp.ones((1,), jnp.float32)]
        self.with_corr_weight = with_corr_weight
        self.compute_dtype = compute_dtype
        self.corr_out_dtype = corr_out_dtype
        self.flow_history = []
        self.residual_pose_history = []
        # TODO(synk): the renderer, SE3 pose algebra (Tij.transform /
        # reprojction_optim), RAFT ImageFeaEncoder/GRU_CFUpdator, grid_sample /
        # affine_grid and cv2 affine estimation are external modules with no
        # self-contained Pallas equivalent; only the correlation-weight and
        # sequence-flow-loss hot paths are implemented as kernels.

    def correlation_weight(self, geofea1_crop, geofea2_crop_warpped, syn_depth):
        return correlation_weight_pallas(self.sigma[0], geofea1_crop,
                                         geofea2_crop_warpped, syn_depth,
                                         compute_dtype=self.compute_dtype,
                                         out_dtype=self.corr_out_dtype)

    def sequence_flow_loss(self, flow_preds, flow_gt, valid, gamma=0.8):
        return raft_sequence_flow_loss_pallas(flow_preds, flow_gt, valid, gamma=gamma,
                                              compute_dtype=self.compute_dtype)


# ---------------------------------------------------------------------------
# Demo / correctness check
# ---------------------------------------------------------------------------
if __name__ == "__main__":
    key = jax.random.PRNGKey(0)
    B, C, H, W, N = 2, 4, 16, 16, 3
    k1, k2, k3, k4, k5, k6 = jax.random.split(key, 6)

    geofea1 = jax.random.normal(k1, (B, C, H, W), jnp.float32)
    geofea2_warped = jax.random.normal(k2, (B, C, H, W), jnp.float32)
    syn_depth = jax.random.uniform(k3, (B, 1, H, W), jnp.float32, minval=-0.5, maxval=1.5)
    flow_preds = [
        3.0 * jax.random.normal(jax.random.fold_in(k4, i), (B, 2, H, W), jnp.float32)
        for i in range(N)
    ]
    flow_gt = 3.0 * jax.random.normal(k5, (B, 2, H, W), jnp.float32)
    valid = jax.random.uniform(k6, (B, H, W), jnp.float32)

    model = PoseRefinerPallas()

    cw = model.correlation_weight(geofea1, geofea2_warped, syn_depth)
    flow_loss, metrics = model.sequence_flow_loss(flow_preds, flow_gt, valid)
    jax.block_until_ready((cw, flow_loss, metrics))

    # ---- pure-JAX references (bf16-rounded where the kernels quantize) ----
    def rt(x):  # bf16 round-trip
        return x.astype(jnp.bfloat16).astype(jnp.float32)

    sigma = model.sigma[0][0]
    dot_ref = jnp.sum(rt(geofea1) * rt(geofea2_warped), axis=1, keepdims=True)
    cw_ref = (jnp.exp(-jnp.abs(1.0 - dot_ref) / sigma)
              * (syn_depth > 0).astype(jnp.float32))[..., None]

    preds_r = [rt(p) for p in flow_preds]        # preds are bf16 in the kernel
    gt_r = flow_gt                               # gt stays f32 in the kernel
    mag = jnp.sqrt(jnp.sum(gt_r ** 2, axis=1))
    valid_b = (valid >= 0.5) & (mag < MAX_FLOW)
    loss_ref = 0.0
    for i in range(N):
        w_i = 0.8 ** (N - i - 1)
        loss_ref = loss_ref + w_i * jnp.mean(valid_b[:, None] * jnp.abs(preds_r[i] - gt_r))
    epe = jnp.sqrt(jnp.sum((preds_r[-1] - gt_r) ** 2, axis=1))
    vm = valid_b.astype(jnp.float32)
    nv = jnp.sum(vm)
    epe_ref = jnp.sum(epe * vm) / nv
    px1_ref = jnp.sum((epe < 1).astype(jnp.float32) * vm) / nv
    px3_ref = jnp.sum((epe < 3).astype(jnp.float32) * vm) / nv
    px5_ref = jnp.sum((epe < 5).astype(jnp.float32) * vm) / nv

    assert cw.shape == (B, 1, H, W, 1)
    assert jnp.allclose(cw, cw_ref, rtol=1e-3, atol=1e-4), "corr_weight mismatch"
    assert jnp.allclose(flow_loss, loss_ref, rtol=1e-3, atol=1e-3), "flow_loss mismatch"
    assert jnp.allclose(metrics["epe"], epe_ref, rtol=1e-3, atol=1e-3), "epe mismatch"
    assert jnp.allclose(metrics["1px"], px1_ref, rtol=1e-3, atol=1e-3), "1px mismatch"
    assert jnp.allclose(metrics["3px"], px3_ref, rtol=1e-3, atol=1e-3), "3px mismatch"
    assert jnp.allclose(metrics["5px"], px5_ref, rtol=1e-3, atol=1e-3), "5px mismatch"

    print("KERNEL_OK")
</pallas_src>

<mosaic_0001>
module attributes {stable_mosaic.version = 11 : i64} {
  func.func @kernel(%arg0: i32, %arg1: i32, %arg2: memref<1xf32, #tpu.memory_space<smem>>, %arg3: memref<1x4x8x128xbf16, #tpu.memory_space<vmem>>, %arg4: memref<1x4x8x128xbf16, #tpu.memory_space<vmem>>, %arg5: memref<1x1x8x128xf32, #tpu.memory_space<vmem>>, %arg6: memref<1x1x8x128xf32, #tpu.memory_space<vmem>>) attributes {dimension_semantics = [#tpu.dimension_semantics<parallel>, #tpu.dimension_semantics<parallel>], iteration_bounds = array<i64: 1, 2>, scalar_prefetch = 0 : i64, scratch_operands = 0 : i64, tpu.core_type = #tpu.core_type<tc>, window_params = [{transform_indices = @transform_0, window_bounds = array<i64: 1>}, {transform_indices = @transform_1, window_bounds = array<i64: 1, 4, 8, 128>}, {transform_indices = @transform_2, window_bounds = array<i64: 1, 4, 8, 128>}, {transform_indices = @transform_3, window_bounds = array<i64: 1, 1, 8, 128>}, {transform_indices = @transform_4, window_bounds = array<i64: 1, 1, 8, 128>}]} {
    %c0 = arith.constant 0 : index
    %0 = memref.load %arg2[%c0] : memref<1xf32, #tpu.memory_space<smem>>
    %c0_0 = arith.constant 0 : index
    %c0_1 = arith.constant 0 : index
    %c0_2 = arith.constant 0 : index
    %c0_3 = arith.constant 0 : index
    %1 = vector.load %arg3[%c0_0, %c0_1, %c0_2, %c0_3] : memref<1x4x8x128xbf16, #tpu.memory_space<vmem>>, vector<1x1x8x128xbf16>
    %2 = vector.shape_cast %1 : vector<1x1x8x128xbf16> to vector<8x128xbf16>
    %3 = arith.extf %2 : vector<8x128xbf16> to vector<8x128xf32>
    %c0_4 = arith.constant 0 : index
    %c0_5 = arith.constant 0 : index
    %c0_6 = arith.constant 0 : index
    %c0_7 = arith.constant 0 : index
    %4 = vector.load %arg4[%c0_4, %c0_5, %c0_6, %c0_7] : memref<1x4x8x128xbf16, #tpu.memory_space<vmem>>, vector<1x1x8x128xbf16>
    %5 = vector.shape_cast %4 : vector<1x1x8x128xbf16> to vector<8x128xbf16>
    %6 = arith.extf %5 : vector<8x128xbf16> to vector<8x128xf32>
    %7 = arith.mulf %3, %6 : vector<8x128xf32>
    %c0_8 = arith.constant 0 : index
    %c1 = arith.constant 1 : index
    %c0_9 = arith.constant 0 : index
    %c0_10 = arith.constant 0 : index
    %8 = vector.load %arg3[%c0_8, %c1, %c0_9, %c0_10] : memref<1x4x8x128xbf16, #tpu.memory_space<vmem>>, vector<1x1x8x128xbf16>
    %9 = vector.shape_cast %8 : vector<1x1x8x128xbf16> to vector<8x128xbf16>
    %10 = arith.extf %9 : vector<8x128xbf16> to vector<8x128xf32>
    %c0_11 = arith.constant 0 : index
    %c1_12 = arith.constant 1 : index
    %c0_13 = arith.constant 0 : index
    %c0_14 = arith.constant 0 : index
    %11 = vector.load %arg4[%c0_11, %c1_12, %c0_13, %c0_14] : memref<1x4x8x128xbf16, #tpu.memory_space<vmem>>, vector<1x1x8x128xbf16>
    %12 = vector.shape_cast %11 : vector<1x1x8x128xbf16> to vector<8x128xbf16>
    %13 = arith.extf %12 : vector<8x128xbf16> to vector<8x128xf32>
    %14 = arith.mulf %10, %13 : vector<8x128xf32>
    %15 = arith.addf %7, %14 : vector<8x128xf32>
    %c0_15 = arith.constant 0 : index
    %c2 = arith.constant 2 : index
    %c0_16 = arith.constant 0 : index
    %c0_17 = arith.constant 0 : index
    %16 = vector.load %arg3[%c0_15, %c2, %c0_16, %c0_17] : memref<1x4x8x128xbf16, #tpu.memory_space<vmem>>, vector<1x1x8x128xbf16>
    %17 = vector.shape_cast %16 : vector<1x1x8x128xbf16> to vector<8x128xbf16>
    %18 = arith.extf %17 : vector<8x128xbf16> to vector<8x128xf32>
    %c0_18 = arith.constant 0 : index
    %c2_19 = arith.constant 2 : index
    %c0_20 = arith.constant 0 : index
    %c0_21 = arith.constant 0 : index
    %19 = vector.load %arg4[%c0_18, %c2_19, %c0_20, %c0_21] : memref<1x4x8x128xbf16, #tpu.memory_space<vmem>>, vector<1x1x8x128xbf16>
    %20 = vector.shape_cast %19 : vector<1x1x8x128xbf16> to vector<8x128xbf16>
    %21 = arith.extf %20 : vector<8x128xbf16> to vector<8x128xf32>
    %22 = arith.mulf %18, %21 : vector<8x128xf32>
    %23 = arith.addf %15, %22 : vector<8x128xf32>
    %c0_22 = arith.constant 0 : index
    %c3 = arith.constant 3 : index
    %c0_23 = arith.constant 0 : index
    %c0_24 = arith.constant 0 : index
    %24 = vector.load %arg3[%c0_22, %c3, %c0_23, %c0_24] : memref<1x4x8x128xbf16, #tpu.memory_space<vmem>>, vector<1x1x8x128xbf16>
    %25 = vector.shape_cast %24 : vector<1x1x8x128xbf16> to vector<8x128xbf16>
    %26 = arith.extf %25 : vector<8x128xbf16> to vector<8x128xf32>
    %c0_25 = arith.constant 0 : index
    %c3_26 = arith.constant 3 : index
    %c0_27 = arith.constant 0 : index
    %c0_28 = arith.constant 0 : index
    %27 = vector.load %arg4[%c0_25, %c3_26, %c0_27, %c0_28] : memref<1x4x8x128xbf16, #tpu.memory_space<vmem>>, vector<1x1x8x128xbf16>
    %28 = vector.shape_cast %27 : vector<1x1x8x128xbf16> to vector<8x128xbf16>
    %29 = arith.extf %28 : vector<8x128xbf16> to vector<8x128xf32>
    %30 = arith.mulf %26, %29 : vector<8x128xf32>
    %31 = arith.addf %23, %30 : vector<8x128xf32>
    %c0_29 = arith.constant 0 : index
    %c0_30 = arith.constant 0 : index
    %c0_31 = arith.constant 0 : index
    %c0_32 = arith.constant 0 : index
    %32 = vector.load %arg5[%c0_29, %c0_30, %c0_31, %c0_32] : memref<1x1x8x128xf32, #tpu.memory_space<vmem>>, vector<1x1x8x128xf32>
    %33 = vector.shape_cast %32 : vector<1x1x8x128xf32> to vector<8x128xf32>
    %cst = arith.constant 0.000000e+00 : f32
    %34 = vector.broadcast %cst : f32 to vector<8x128xf32>
    %35 = arith.cmpf ogt, %33, %34 : vector<8x128xf32>
    %36 = arith.extui %35 : vector<8x128xi1> to vector<8x128xi32>
    %37 = arith.sitofp %36 : vector<8x128xi32> to vector<8x128xf32>
    %cst_33 = arith.constant 1.000000e+00 : f32
    %38 = vector.broadcast %cst_33 : f32 to vector<8x128xf32>
    %39 = arith.subf %38, %31 : vector<8x128xf32>
    %40 = math.absf %39 : vector<8x128xf32>
    %cst_34 = arith.constant 0.000000e+00 : f32
    %41 = vector.broadcast %cst_34 : f32 to vector<8x128xf32>
    %42 = arith.subf %41, %40 : vector<8x128xf32>
    %43 = vector.broadcast %0 : f32 to vector<8x128xf32>
    %44 = arith.mulf %42, %43 : vector<8x128xf32>
    %45 = math.exp %44 : vector<8x128xf32>
    %46 = arith.mulf %45, %37 : vector<8x128xf32>
    %c0_35 = arith.constant 0 : index
    %c0_36 = arith.constant 0 : index
    %c0_37 = arith.constant 0 : index
    %c0_38 = arith.constant 0 : index
    %47 = vector.load %arg6[%c0_35, %c0_36, %c0_37, %c0_38] : memref<1x1x8x128xf32, #tpu.memory_space<vmem>>, vector<1x1x8x128xf32>
    %48 = vector.shape_cast %47 : vector<1x1x8x128xf32> to vector<8x128xf32>
    %49 = vector.shape_cast %46 : vector<8x128xf32> to vector<1x1x8x128xf32>
    tpu.vector_store %arg6[%c0_35, %c0_36, %c0_37, %c0_38], %49 {strides = array<i32>} : memref<1x1x8x128xf32, #tpu.memory_space<vmem>>, vector<1x1x8x128xf32>,
    return
  }
  func.func @transform_0(%arg0: i32, %arg1: i32) -> i32 {
    %c0_i32 = arith.constant 0 : i32
    %c0_i32_0 = arith.constant 0 : i32
    return %c0_i32 : i32
  }
  func.func @transform_1(%arg0: i32, %arg1: i32) -> (i32, i32, i32, i32) {
    %c0_i32 = arith.constant 0 : i32
    %c0_i32_0 = arith.constant 0 : i32
    %c0_i32_1 = arith.constant 0 : i32
    return %arg1, %c0_i32, %arg0, %c0_i32_0 : i32, i32, i32, i32
  }
  func.func @transform_2(%arg0: i32, %arg1: i32) -> (i32, i32, i32, i32) {
    %c0_i32 = arith.constant 0 : i32
    %c0_i32_0 = arith.constant 0 : i32
    %c0_i32_1 = arith.constant 0 : i32
    return %arg1, %c0_i32, %arg0, %c0_i32_0 : i32, i32, i32, i32
  }
  func.func @transform_3(%arg0: i32, %arg1: i32) -> (i32, i32, i32, i32) {
    %c0_i32 = arith.constant 0 : i32
    %c0_i32_0 = arith.constant 0 : i32
    %c0_i32_1 = arith.constant 0 : i32
    return %arg1, %c0_i32, %arg0, %c0_i32_0 : i32, i32, i32, i32
  }
  func.func @transform_4(%arg0: i32, %arg1: i32) -> (i32, i32, i32, i32) {
    %c0_i32 = arith.constant 0 : i32
    %c0_i32_0 = arith.constant 0 : i32
    %c0_i32_1 = arith.constant 0 : i32
    return %arg1, %c0_i32, %arg0, %c0_i32_0 : i32, i32, i32, i32
  }
}

</mosaic_0001>

<bundles_post_ra>
// kernel: tpu_custom_call.1
= control target key start
LH: loop header
LB: loop body
LE: loop exit
PB: predicated region body
PF: predicated region fallthrough
CT: control target
= control target key end

     0   :  { %s999_s0 = inlined_call_operand.<no memory space> [shape: f32[1], index: 0, kind: input, shape index: {}]   ;;  %s1000_s1 = inlined_call_operand.hbm [shape: bf16[2,4,8,128], index: 1, kind: input, shape index: {}]   ;;  %s1001_s2 = inlined_call_operand.hbm [shape: bf16[2,4,8,128], index: 2, kind: input, shape index: {}]   ;;  %s1002_s3 = inlined_call_operand.hbm [shape: f32[2,1,8,128], index: 3, kind: input, shape index: {}]   ;;  %s1003_s4 = inlined_call_operand.hbm [shape: f32[2,1,8,128], index: 4, kind: output, shape index: {}]  }
   0x1   :  { %1006 = sst [smem:[#allocation16_spill]] %s1001_s2 }
   0x2   :  { %9 = sst [smem:[#allocation2]] %s999_s0 }
   0x3   :  { %10 = vsyncpa [#allocation4], 0 }
   0x4   :  { %12 = vsyncpa [#allocation4 + $0x1], 0 }
   0x5   :  { %13 = vsyncpa [#allocation7], 0 }
   0x6   :  { %15 = vsyncpa [#allocation7 + $0x1], 0 }
   0x7   :  { %16 = vsyncpa [#allocation5], 0 }
   0x8   :  { %18 = vsyncpa [#allocation5 + $0x1], 0  ;;  %s811_s17 = smov 0   ;;  %s813_s18 = smov 0  }
   0x9   :  { %s815_s19 = smov 0   ;;  %s817_s20 = smov 0  }
   0xa   :  { %s819_s21 = smov 0   ;;  %s821_s22 = smov 0  }
   0xb LB: > { %1007 = sst [smem:[#allocation13_spill]] %s762_s19  ;;  %s842_s0 = sadd.s32 4294967295, %s774_s22   ;;  %s774_s22 = sphi %s821_s22, %s24_s22   ;;  %s770_s21 = sphi %s819_s21, %s1024_s21   ;;  %s766_s20 = sphi %s817_s20, %s1023_s20   ;;  %s762_s19 = sphi %s815_s19, %s1019_s19   ;;  %s758_s18 = sphi %s813_s18, %s1022_s18   ;;  %s754_s17 = sphi %s811_s17, %s1021_s17  }
   0xc   : > { %s500_s23 = sadd.s32 4294967294, %s774_s22   ;;  %s33_s24 = sadd.s32 1, %s770_s21 }
   0xd   : > { %s66_s25 = sadd.s32 1, %s762_s19  ;;  %p34_p0 = scmp.ge.s32.totalorder %s33_s24, 2 }
   0xe   : > { %p73_p1 = scmp.ne.s32.totalorder %s762_s19, %s758_s18  ;;  %p74_p2 = scmp.eq.s32.totalorder %s774_s22, 0 }
   0xf   : > { %p79_p3 = scmp.ne.s32.totalorder %s758_s18, %s754_s17  ;;  %s1026_s24 = smov (%p34_p0, %s33_s24), 0 }
  0x10   : > { %1008 = sst [smem:[#allocation14_spill]] %s1026_s24  ;;  %p854_p4 = por %p74_p2, %p73_p1 }
  0x11   : > { %p80_p5 = scmp.eq.s32.totalorder %s842_s0, 0  ;;  %s61_s27 = ssub.s32 %s770_s21, %s1026_s24 }
  0x12   : > { %p161_p6 = scmp.eq.s32.totalorder %s842_s0, 1  ;;  %p64_p7 = scmp.eq.s32.totalorder %s61_s27, 0 }
  0x13   : > { %p862_p8 = por %p80_p5, %p79_p3  ;;  %p167_p10 = scmp.eq.s32.totalorder %s500_s23, 1 }
  0x14   : > { %p866_p9 = por %p161_p6, %p73_p1  ;;  %p551_p13 = scmp.lt.s32.totalorder %s774_s22, 2 }
  0x15   : > { %s871_s30 = scalar_select %p64_p7, %s762_s19, %s66_s25  }
  0x16   : > { %p873_p11 = por %p167_p10, %p79_p3  ;;  %s880_s6 = sand.u32 1, %s762_s19  }
  0x17   : > { %1012 = sst [smem:[#allocation15_spill]] %s871_s30  ;;  %s503_s7 = sshll.u32 %s880_s6, 4 }
  0x18   : > { %s527_s8 = sshll.u32 %s770_s21, 8  ;;  %p886_p0 = pnand %p551_p13, %p854_p4 }
  0x19   : > { %s212_s10 = sand.u32 1, %s774_s22   ;;  %s1015_s2 = sld [smem:[#allocation16_spill]] }
  0x1a   : > { %s216_s14 = scalar_lea.vmem [#allocation6], %s503_s7  ;;  %p511_p1 = scmp.ge.s32.totalorder %s774_s22, 1 }
  0x1b   : > { %s224_s15 = sshll.u32 %s216_s14, 4  ;;  %p251_p2 = scmp.lt.s32.totalorder %s774_s22, 3  ;;  %s225_s15 = int_to_ptr.vmem [resolvable:$true] %s224_s15 }
  0x1c   : > { %s900_s16 = scalar_lea.sflag [#allocation7], %s212_s10  ;;  %p608_p3 = pneg %p886_p0 }
  0x1d   : > { %s619_s23 = scalar_lea.vmem %s225_s15, 256  ;;  %s776_s25 = smov [#allocation6]  }
  0x1e   : > { %p620_p4 = scmp.ne.s32.totalorder %s225_s15, %s619_s23  ;;  %s624_s26 = sshll.u32 %s776_s25, 4  ;;  %s625_s26 = int_to_ptr.vmem [resolvable:$false] %s624_s26 }
  0x1f   : > { %s223_s13 = scalar_lea.hbm %s1015_s2, %s527_s8  ;;  %s626_s27 = scalar_lea.vmem %s625_s26, 512 }
  0x20   : > { %p622_p5 = pnand %p620_p4, %p608_p3  ;;  %p627_p7 = scmp.lt.s32.totalorder %s225_s15, %s625_s26 }
  0x21   : > { %p628_p10 = scmp.lt.s32.totalorder %s626_s27, %s619_s23 }
  0x22   : > { %p623_p6 = pneg %p622_p5 }
  0x23   : > { %p629_p13 = por %p628_p10, %p627_p7 }
  0x25   : > { %p630_p12 = pnand %p629_p13, %p623_p6 }
  0x27   : > { %633 = shalt.err (!%p630_p12)
}
  0x28   : > { %s777_s11 = smov 64   ;;  %s778_s10 = smov 4  }
  0x29   : > { %543 = dma.hbm_to_vmem [thread:$0]  (!%p886_p0), %s223_s13, 256, %s225_s15, %s900_s16, %s777_s11, %s777_s11, %s778_s10  }
  0x2a   : > { %p914_p4 = pnand %p511_p1, %p251_p2  ;;  %s201_s25 = scalar_lea.hbm %s1000_s1, %s527_s8 }
  0x2b   : > { %s194_s26 = scalar_lea.vmem [#allocation3], %s503_s7  ;;  %s509_s2 = sshll.u32 %s880_s6, 3 }
  0x2c   : > { %s202_s27 = sshll.u32 %s194_s26, 4  ;;  %s191_s24 = scalar_lea.sflag [#allocation4], %s880_s6  ;;  %s203_s27 = int_to_ptr.vmem [resolvable:$true] %s202_s27 }
  0x2d   : > { %s647_s30 = scalar_lea.vmem %s203_s27, 256  ;;  %s779_s13 = smov [#allocation3]  }
  0x2e   : > { %p648_p12 = scmp.ne.s32.totalorder %s203_s27, %s647_s30  ;;  %s652_s15 = sshll.u32 %s779_s13, 4  ;;  %s653_s15 = int_to_ptr.vmem [resolvable:$false] %s652_s15 }
  0x2f   : > { %s654_s19 = scalar_lea.vmem %s653_s15, 512  ;;  %p655_p2 = scmp.lt.s32.totalorder %s203_s27, %s653_s15 }
  0x30   : > { %p650_p5 = pnand %p648_p12, %p608_p3  ;;  %p656_p6 = scmp.lt.s32.totalorder %s654_s19, %s647_s30 }
  0x32   : > { %p651_p1 = pneg %p650_p5  ;;  %p657_p7 = por %p656_p6, %p655_p2 }
  0x34   : > { %p658_p10 = pnand %p657_p7, %p651_p1 }
  0x36   : > { %661 = shalt.err (!%p658_p10)
}
  0x37   : > { %540 = dma.hbm_to_vmem [thread:$0]  (!%p886_p0), %s201_s25, 256, %s203_s27, %s191_s24, %s777_s11, %s777_s11, %s778_s10  }
  0x38   : > { %s510_s6 = sshll.u32 %s770_s21, 7  ;;  %s238_s7 = scalar_lea.vmem [#allocation8], %s509_s2 }
  0x39   : > { %s246_s8 = sshll.u32 %s238_s7, 4  ;;  %s244_s26 = scalar_lea.hbm %s1002_s3, %s510_s6  ;;  %s247_s8 = int_to_ptr.vmem [resolvable:$true] %s246_s8 }
  0x3a   : > { %s675_s13 = scalar_lea.vmem %s247_s8, 128  ;;  %s780_s19 = smov [#allocation8]  }
  0x3b   : > { %p676_p13 = scmp.ne.s32.totalorder %s247_s8, %s675_s13  ;;  %s680_s30 = sshll.u32 %s780_s19, 4  ;;  %s681_s30 = int_to_ptr.vmem [resolvable:$false] %s680_s30 }
  0x3c   : > { %s682_s15 = scalar_lea.vmem %s681_s30, 256  ;;  %p683_p1 = scmp.lt.s32.totalorder %s247_s8, %s681_s30 }
  0x3d   : > { %p678_p12 = pnand %p676_p13, %p608_p3  ;;  %p684_p2 = scmp.lt.s32.totalorder %s682_s15, %s675_s13 }
  0x3f   : > { %p679_p5 = pneg %p678_p12  ;;  %p685_p6 = por %p684_p2, %p683_p1 }
  0x41   : > { %p686_p7 = pnand %p685_p6, %p679_p5 }
  0x43   : > { %689 = shalt.err (!%p686_p7)
}
  0x44   : > { %546 = dma.hbm_to_vmem [thread:$0]  (!%p886_p0), %s244_s26, 128, %s247_s8, %s900_s16  }
  0x45   : > { %255 = sbr.rel (%p914_p4) target bundleno = 129 (0x81), region = 36  ;;  %s945_s2 = sand.u32 (!%p914_p4), 1, %s758_s18  }
  0x46   : > { %s512_s24 = sshll.u32 (!%p914_p4), %s945_s2, 4  ;;  %s258_s11 = scalar_lea.sflag (!%p914_p4), [#allocation4], %s945_s2 }
  0x47   : > { %s261_s10 = scalar_lea.vmem (!%p914_p4), [#allocation3], %s512_s24 }
  0x4a   : > { %741 = dma.done.wait (%p862_p8), %s258_s11, 256  }
  0x4b   : > { %743 = vsyncadd (%p862_p8), %s258_s11, 4294967040  ;;  %s266_s9 = sand.u32 1, %s842_s0   ;;  %s270_s12 = scalar_lea.vmem [#allocation6], %s512_s24 }
  0x4c   : > { %s267_s16 = scalar_lea.sflag [#allocation7], %s266_s9 }
  0x4d   : > { %745 = dma.done.wait (%p862_p8), %s267_s16, 384  }
  0x4e   : > { %747 = vsyncadd (%p862_p8), %s267_s16, 4294966912  ;;  %v315_v0 = vld [vmem:[%s261_s10] sm:$0xff]   ;;  %v518_v2 = vld [vmem:[%s261_s10 + $0x8] sm:$0xff]   ;;  %s314_s0 = sld [smem:[#allocation2]]  ;;  %s514_s28 = sshll.u32 %s945_s2, 3  ;;  %v781_v26 = vmov 0.0  }
  0x4f   : > { %v317_v1 = vld [vmem:[%s270_s12] sm:$0xff]   ;;  %v316_v3 = vunpack.c.l.bf16 %v315_v0  ;;  %v322_v5 = vunpack.c.h.bf16 %v315_v0  ;;  %v519_v7 = vld [vmem:[%s270_s12 + $0x8] sm:$0xff]   ;;  %v330_v8 = vunpack.c.l.bf16 %v518_v2  ;;  %v338_v10 = vunpack.c.h.bf16 %v518_v2  ;;  %s279_s25 = scalar_lea.vmem [#allocation8], %s514_s28  ;;  %s313_s27 = scalar_lea.vmem [#allocation9], %s514_s28 }
  0x50   : > { %v318_v4 = vunpack.c.l.bf16 %v317_v1  ;;  %v325_v6 = vunpack.c.h.bf16 %v317_v1  ;;  %v333_v9 = vunpack.c.l.bf16 %v519_v7  ;;  %v341_v11 = vunpack.c.h.bf16 %v519_v7  ;;  %v344_v25 = vld [vmem:[%s279_s25] sm:$0xff]  ;;  %s372_s6 = sshll.u32 %s313_s27, 4  ;;  %s524_s7 = sshll.u32 %s766_s20, 7  ;;  %s373_s6 = int_to_ptr.vmem [resolvable:$true] %s372_s6 }
  0x51   : > { %vm345_vm0 = vcmp.gt.f32.partialorder %v344_v25, 0.0  ;;  %s370_s23 = scalar_lea.hbm %s1003_s4, %s524_s7  ;;  %s358_s26 = scalar_lea.sflag [#allocation5], %s945_s2 }
  0x52   : > { %v319_v12 = vmul.f32 %v318_v4, %v316_v3  ;;  %v326_v13 = vmul.f32 %v325_v6, %v322_v5  ;;  %v334_v14 = vmul.f32 %v333_v9, %v330_v8  ;;  %v342_v16 = vmul.f32 %v341_v11, %v338_v10  ;;  %s690_s13 = scalar_lea.vmem %s373_s6, 128  ;;  %s782_s19 = smov [#allocation9]  }
  0x53   : > { %v522_v27 = vsel %vm345_vm0, 1.0, %v781_v26  ;;  %p691_p8 = scmp.ne.s32.totalorder %s373_s6, %s690_s13  ;;  %s694_s30 = sshll.u32 %s782_s19, 4  ;;  %s695_s30 = int_to_ptr.vmem [resolvable:$false] %s694_s30 }
  0x54   : > { %v327_v15 = vadd.f32 %v326_v13, %v319_v12  ;;  %v351_v21 = vstv %s314_s0  ;;  %s696_s15 = scalar_lea.vmem %s695_s30, 256  ;;  %p697_p4 = scmp.lt.s32.totalorder %s373_s6, %s695_s30 }
  0x55   : > { %p692_p0 = pnand %p691_p8, %p866_p9  ;;  %p698_p10 = scmp.lt.s32.totalorder %s696_s15, %s690_s13 }
  0x56   : > { %v335_v17 = vadd.f32 %v334_v14, %v327_v15 }
  0x57   : > { %p693_p3 = pneg %p692_p0  ;;  %p699_p13 = por %p698_p10, %p697_p4 }
  0x58   : > { %v343_v18 = vadd.f32 %v342_v16, %v335_v17 }
  0x59   : > { %p700_p12 = pnand %p699_p13, %p693_p3 }
  0x5a   : > { %v348_v19 = vsub.f32 1.0, %v343_v18 }
  0x5c   : > { %v349_v20 = vand.u32 2147483647, %v348_v19 }
  0x5e   : > { %v350_v22 = vsub.f32 0.0, %v349_v20 }
  0x60   : > { %v352_v23 = vmul.f32 %v351_v21, %v350_v22 }
  0x62   : > { %v353_v24 = vmul.f32 1.442695, %v352_v23 }
  0x64   : > { %604 = vpow2.f32 %v353_v24 }
  0x71   : > { %v605_v28 = vpop.eup %604 }
  0x72   : > { %v355_v29 = vmul.f32 %v605_v28, %v522_v27 }
  0x74   : > { %356 = vst [vmem:[%s313_s27] sm:$0xff] %v355_v29 }
  0x75   : > { %703 = shalt.err (!%p700_p12)
}
  0x76   : > { %s704_s20 = scalar_lea.hbm %s370_s23, 128  ;;  %s708_s11 = scalar_lea.hbm %s1003_s4, 256 }
  0x77   : > { %p705_p5 = scmp.ne.s32.totalorder %s370_s23, %s704_s20  ;;  %p709_p6 = scmp.lt.s32.totalorder %s370_s23, %s1003_s4 }
  0x78   : > { %p710_p7 = scmp.lt.s32.totalorder %s708_s11, %s704_s20 }
  0x79   : > { %p706_p1 = pnand %p705_p5, %p866_p9 }
  0x7a   : > { %p711_p8 = por %p710_p7, %p709_p6 }
  0x7b   : > { %p707_p2 = pneg %p706_p1 }
  0x7d   : > { %p712_p0 = pnand %p711_p8, %p707_p2 }
  0x7f   : > { %715 = shalt.err (!%p712_p0)
}
  0x80   : > { %535 = dma.vmem_to_hbm [thread:$0]  (%p866_p9), %s373_s6, 128, %s370_s23, %s358_s26  }
  0x81 PF: > { %s384_s16 = sand.u32 1, %s754_s17   ;;  %p1017_p3 = scmp.ge.s32.totalorder %s774_s22, 2 }
  0x82   : > { %s385_s12 = scalar_lea.sflag [#allocation5], %s384_s16 }
  0x83   : > { %p548_p4 = pnand %p1017_p3, %p873_p11 }
  0x85   : > { %p549_p10 = pneg %p548_p4 }
  0x87   : > { %749 = dma.done.wait (%p549_p10), %s385_s12, 128  }
  0x88   : > { %751 = vsyncadd (%p549_p10), %s385_s12, 4294967168  ;;  %s24_s22 = sadd.s32 1, %s774_s22   ;;  %s1018_s0 = sld [smem:[#allocation13_spill]] }
  0x89   : > { %p21_p13 = scmp.ge.s32.totalorder %s24_s22, 4   ;;  %s1019_s19 = sld [smem:[#allocation15_spill]] }
  0x8a   : > { %s1020_s29 = sld [smem:[#allocation14_spill]]  ;;  %s1021_s17 = smov %s758_s18 }
  0x8b   : > { %s1023_s20 = smov %s770_s21 }
  0x8c   :  { %23 = sbr.rel (!%p21_p13) target bundleno = 11 (0xb), region = 111 }
  0x8e   : > { %s1022_s18 = smov %s1018_s0 }
  0x90   : > { %s1024_s21 = smov %s1020_s29 }
  0x91   :  { %390 = vsyncpa [#allocation4], 1 }
  0x92   :  { %392 = vsyncpa [#allocation4 + $0x1], 1 }
  0x93   :  { %393 = vsyncpa [#allocation7], 1 }
  0x94   :  { %395 = vsyncpa [#allocation7 + $0x1], 1 }
  0x95   :  { %396 = vsyncpa [#allocation5], 1 }
  0x96   :  { %398 = vsyncpa [#allocation5 + $0x1], 1 }

</bundles_post_ra>
